<compile_context>
chip_gen: v7x
topology: tpu7x:2x2x1
jax: 0.10.0
libtpu: 0.0.40
codegen_flags: <defaults>
</compile_context>

<pallas_src>
import jax
import jax.numpy as jnp
from jax import lax
from jax.experimental import pallas as pl
from jax.experimental.pallas import tpu as pltpu


def _round_up(x: int, m: int) -> int:
    return ((x + m - 1) // m) * m


def _vmem_budget_bytes() -> int:
    # Physical VMEM differs per generation (v5e/v6e: 128 MiB, v7x: 64 MiB).
    try:
        cap = int(pltpu.get_tpu_info().vmem_capacity_bytes)
    except Exception:
        cap = 64 * 1024 * 1024          # conservative (v7x-safe) fallback
    return (cap * 3) // 4               # headroom for Mosaic internals


# ----------------------------------------------------------------------------
# Path B: resident-table one-hot MXU gather (small tables only)
# ----------------------------------------------------------------------------
def _onehot_gather_kernel(labels_ref, w_ref, o_ref):
    # labels_ref: (TQ, 1) int32 block of clamped label indices.
    # w_ref:      (E, Dp) full table, single VMEM-resident copy (memory_space).
    # o_ref:      (TQ, Dp) lane/sublane-dense output block.
    tq = o_ref.shape[0]
    num_emb = w_ref.shape[0]
    labels = labels_ref[...]                                     # (TQ, 1)
    iota = lax.broadcasted_iota(jnp.int32, (tq, num_emb), 1)
    onehot = (labels == iota).astype(w_ref.dtype)                # (TQ, E)
    # Gather TQ rows in one MXU matmul; HIGHEST precision keeps f32 exact.
    o_ref[...] = lax.dot_general(
        onehot, w_ref[...],
        dimension_numbers=(((1,), (0,)), ((), ())),
        preferred_element_type=jnp.float32,
        precision=lax.Precision.HIGHEST,
    ).astype(o_ref.dtype)


def _onehot_path(w, flat, n, num_emb, d_pad, itemsize, block_rows, budget):
    tq = block_rows if n > block_rows else _round_up(max(n, 1), 8)
    n_pad = _round_up(n, tq)
    if n_pad != n:
        flat = jnp.pad(flat, (0, n_pad - n))    # pad with row 0; sliced later
    labels2d = flat.reshape(n_pad, 1)
    grid = (n_pad // tq,)

    table_bytes = num_emb * d_pad * itemsize
    # Single-buffered table + double-buffered label/out blocks + in-kernel
    # intermediates (iota + one-hot + f32 matmul result) + headroom.
    need = (table_bytes
            + 2 * tq * (4 + d_pad * itemsize)
            + tq * num_emb * (4 + itemsize)
            + tq * d_pad * 4
            + (4 << 20))
    vmem_bytes = int(min(budget, max(need, 16 << 20)))

    cost = pl.CostEstimate(
        flops=2 * n_pad * num_emb * d_pad,
        transcendentals=0,
        bytes_accessed=table_bytes + n_pad * 4 + n_pad * d_pad * itemsize)

    # Tiny grids: "arbitrary" so v7x's two cores don't each pull a table copy.
    sem = ("parallel",) if grid[0] >= 4 else ("arbitrary",)

    return pl.pallas_call(
        _onehot_gather_kernel,
        out_shape=jax.ShapeDtypeStruct((n_pad, d_pad), w.dtype),
        grid_spec=pltpu.PrefetchScalarGridSpec(
            num_scalar_prefetch=0,
            grid=grid,
            in_specs=[
                pl.BlockSpec((tq, 1), lambda i: (i, 0)),
                # Whole table, one VMEM-resident copy (no double buffering
                # for a block that never changes across the grid).
                pl.BlockSpec(memory_space=pltpu.MemorySpace.VMEM),
            ],
            out_specs=pl.BlockSpec((tq, d_pad), lambda i: (i, 0)),
        ),
        compiler_params=pltpu.CompilerParams(
            dimension_semantics=sem,
            vmem_limit_bytes=vmem_bytes,
        ),
        cost_estimate=cost,
    )(labels2d, w)


# ----------------------------------------------------------------------------
# Path A: scalar-prefetch + manual DMA row gather (table stays in HBM)
# ----------------------------------------------------------------------------
def _dma_gather_kernel(labels_ref, w_hbm, o_ref, row_buf, sems):
    # labels_ref: (n_pad,) int32, scalar-prefetched into SMEM.
    # w_hbm:      (E, Dp) table left in HBM (memory_space=pl.ANY).
    # o_ref:      (TQ, Dp) output block (lane/sublane-dense store).
    # row_buf:    (TQ, Dp) VMEM scratch; sems: (TQ,) DMA semaphores.
    tq = o_ref.shape[0]
    base = pl.program_id(0) * tq
    copies = []
    for r in range(tq):                      # TQ is a small compile-time const
        lab = labels_ref[base + r]
        cp = pltpu.make_async_copy(
            w_hbm.at[pl.ds(lab, 1), :],
            row_buf.at[pl.ds(r, 1), :],
            sems.at[r])
        cp.start()
        copies.append(cp)
    for cp in copies:                        # overlap all TQ row DMAs
        cp.wait()
    o_ref[...] = row_buf[...]


def _dma_gather_path(w, flat, n, num_emb, d_pad, itemsize, gather_rows):
    tq = gather_rows
    n_pad = _round_up(max(n, 1), tq)
    if n_pad != n:
        flat = jnp.pad(flat, (0, n_pad - n))
    grid = (n_pad // tq,)

    cost = pl.CostEstimate(
        flops=0,
        transcendentals=0,
        bytes_accessed=n_pad * 4 + 2 * n_pad * d_pad * itemsize)

    return pl.pallas_call(
        _dma_gather_kernel,
        out_shape=jax.ShapeDtypeStruct((n_pad, d_pad), w.dtype),
        grid_spec=pltpu.PrefetchScalarGridSpec(
            num_scalar_prefetch=1,                         # labels -> SMEM
            grid=grid,
            in_specs=[pl.BlockSpec(memory_space=pl.ANY)],  # table stays in HBM
            out_specs=pl.BlockSpec((tq, d_pad), lambda i, lab: (i, 0)),
            scratch_shapes=[
                pltpu.VMEM((tq, d_pad), w.dtype),
                pltpu.SemaphoreType.DMA((tq,)),
            ],
        ),
        compiler_params=pltpu.CompilerParams(
            dimension_semantics=("parallel",)),
        cost_estimate=cost,
    )(flat, w)


# ----------------------------------------------------------------------------
# Public wrapper: BaseEmbedding.forward == weight[labels]
# ----------------------------------------------------------------------------
def embedding_lookup(weight: jax.Array, labels: jax.Array, *,
                     block_rows: int = 512, gather_rows: int = 8,
                     onehot_max_embeddings: int = 1024,
                     path: str = "auto") -> jax.Array:
    """Pallas equivalent of `self.weight[labels]`."""
    num_emb, emb_dim = weight.shape
    itemsize = jnp.dtype(weight.dtype).itemsize

    # Lane-dense output: pad D up to a multiple of 128; sliced off at the end.
    d_pad = _round_up(emb_dim, 128)
    w = weight if d_pad == emb_dim else jnp.pad(
        weight, ((0, 0), (0, d_pad - emb_dim)))

    # Bounds handling: PyTorch raises IndexError on OOB labels; here we clamp
    # (same as jnp.take on TPU) so the kernel never reads out of bounds.
    flat = jnp.clip(labels.reshape(-1).astype(jnp.int32), 0, num_emb - 1)
    n = flat.shape[0]

    budget = _vmem_budget_bytes()
    table_bytes = num_emb * d_pad * itemsize

    if path == "auto":
        tq_est = block_rows if n > block_rows else _round_up(max(n, 1), 8)
        need = (table_bytes
                + 2 * tq_est * (4 + d_pad * itemsize)
                + tq_est * num_emb * (4 + itemsize)
                + tq_est * d_pad * 4
                + (4 << 20))
        # One-hot matmul costs 2*E*D flops per row: only worth it for small E
        # and only if the table (single copy) fits comfortably in VMEM.
        path = ("onehot"
                if (num_emb <= onehot_max_embeddings and need <= budget)
                else "gather")

    if path == "onehot":
        out = _onehot_path(w, flat, n, num_emb, d_pad, itemsize,
                           block_rows, budget)
    else:
        out = _dma_gather_path(w, flat, n, num_emb, d_pad, itemsize,
                               gather_rows)

    out = out[:n, :emb_dim]
    return out.reshape(labels.shape + (emb_dim,))


def init_base_embedding(key, num_embeddings: int, embedding_dim: int) -> jax.Array:
    # Matches reset_embeddings(): nn.init.uniform_(weight, a=-0.001, b=0.001).
    # TODO(synk): ManifoldParameter / PoincareBallExact projection semantics
    # are not modeled; at |w| <= 0.001 the points are trivially inside the ball.
    return jax.random.uniform(
        key, (num_embeddings, embedding_dim),
        dtype=jnp.float32, minval=-0.001, maxval=0.001)


if __name__ == "__main__":
    key = jax.random.PRNGKey(0)
    k_w, k_l = jax.random.split(key)

    num_embeddings = 32
    embedding_dim = 128          # lane-aligned hidden size
    batch, seq = 2, 8

    weight = init_base_embedding(k_w, num_embeddings, embedding_dim)
    labels = jax.random.randint(k_l, (batch, seq), 0, num_embeddings,
                                dtype=jnp.int32)

    ref = jnp.take(weight, labels, axis=0)     # == torch weight[labels]

    # Auto path (tiny table -> VMEM-resident one-hot MXU gather).
    out_onehot = jax.block_until_ready(embedding_lookup(weight, labels))
    assert out_onehot.shape == (batch, seq, embedding_dim)
    assert jnp.allclose(out_onehot, ref), "one-hot path mismatch"

    # Force the scalar-prefetch DMA-gather path (used for large tables).
    out_gather = jax.block_until_ready(
        embedding_lookup(weight, labels, path="gather"))
    assert out_gather.shape == (batch, seq, embedding_dim)
    assert jnp.allclose(out_gather, ref), "DMA-gather path mismatch"

    print("KERNEL_OK")
</pallas_src>

<mosaic_0001>
module attributes {stable_mosaic.version = 11 : i64} {
  func.func @_onehot_gather_kernel(%arg0: i32, %arg1: memref<16x1xi32, #tpu.memory_space<vmem>>, %arg2: memref<32x128xf32, #tpu.memory_space<vmem>>, %arg3: memref<16x128xf32, #tpu.memory_space<vmem>>) attributes {dimension_semantics = [#tpu.dimension_semantics<arbitrary>], iteration_bounds = array<i64: 1>, scalar_prefetch = 0 : i64, scratch_operands = 0 : i64, tpu.core_type = #tpu.core_type<tc>, window_params = [{transform_indices = @transform_0, window_bounds = array<i64: 16, 1>}, {pipeline_mode = #tpu.pipeline_mode<synchronous>, transform_indices = @transform_1, window_bounds = array<i64: 32, 128>}, {transform_indices = @transform_2, window_bounds = array<i64: 16, 128>}]} {
    %c0 = arith.constant 0 : index
    %c0_0 = arith.constant 0 : index
    %0 = vector.load %arg1[%c0, %c0_0] : memref<16x1xi32, #tpu.memory_space<vmem>>, vector<16x1xi32>
    %1 = tpu.iota {dimensions = array<i32: 1>} : vector<16x32xi32>
    %2 = vector.broadcast %0 : vector<16x1xi32> to vector<16x32xi32>
    %3 = arith.cmpi eq, %2, %1 : vector<16x32xi32>
    %4 = arith.extui %3 : vector<16x32xi1> to vector<16x32xi32>
    %5 = arith.sitofp %4 : vector<16x32xi32> to vector<16x32xf32>
    %c0_1 = arith.constant 0 : index
    %c0_2 = arith.constant 0 : index
    %6 = vector.load %arg2[%c0_1, %c0_2] : memref<32x128xf32, #tpu.memory_space<vmem>>, vector<32x128xf32>
    %cst = arith.constant dense<0.000000e+00> : vector<16x128xf32>
    %7 = tpu.matmul %5, %6, %cst {dimension_numbers = #tpu.dot_dimension_numbers<[1], [0], [0], [1], [0, 0, 1, 1], [], []>, precision = #tpu.contract_precision<fp32>} : vector<16x32xf32>, vector<32x128xf32>, vector<16x128xf32> -> vector<16x128xf32>
    %c0_3 = arith.constant 0 : index
    %c0_4 = arith.constant 0 : index
    %8 = vector.load %arg3[%c0_3, %c0_4] : memref<16x128xf32, #tpu.memory_space<vmem>>, vector<16x128xf32>
    tpu.vector_store %arg3[%c0_3, %c0_4], %7 {strides = array<i32>} : memref<16x128xf32, #tpu.memory_space<vmem>>, vector<16x128xf32>,
    return
  }
  func.func @transform_0(%arg0: i32) -> (i32, i32) {
    %c0_i32 = arith.constant 0 : i32
    %c0_i32_0 = arith.constant 0 : i32
    return %arg0, %c0_i32 : i32, i32
  }
  func.func @transform_1(%arg0: i32) -> (i32, i32) {
    %c0_i32 = arith.constant 0 : i32
    %c0_i32_0 = arith.constant 0 : i32
    %c0_i32_1 = arith.constant 0 : i32
    return %c0_i32, %c0_i32_0 : i32, i32
  }
  func.func @transform_2(%arg0: i32) -> (i32, i32) {
    %c0_i32 = arith.constant 0 : i32
    %c0_i32_0 = arith.constant 0 : i32
    return %arg0, %c0_i32 : i32, i32
  }
}

</mosaic_0001>

<bundles_post_ra>
// kernel: tpu_custom_call.1
= control target key start
LH: loop header
LB: loop body
LE: loop exit
PB: predicated region body
PF: predicated region fallthrough
CT: control target
= control target key end

     0   :  { %7 = vsyncpa [#allocation3], 0  ;;  %s904_s0 = inlined_call_operand.vmem [shape: s32[16,1], index: 0, kind: input, shape index: {}]   ;;  %s905_s1 = inlined_call_operand.hbm [shape: f32[32,128], index: 1, kind: input, shape index: {}]   ;;  %s906_s2 = inlined_call_operand.hbm [shape: f32[16,128], index: 2, kind: output, shape index: {}]  }
   0x1   :  { %8 = vsyncpa [#allocation4], 0  ;;  %s823_s9 = smov [#allocation2]   ;;  %s775_s13 = scalar_lea.hbm %s905_s1, 512 }
   0x2   :  { %s16_s10 = sshll.u32 %s823_s9, 4  ;;  %p776_p0 = scmp.ne.s32.totalorder %s905_s1, %s775_s13  ;;  %s17_s10 = int_to_ptr.vmem [resolvable:$true] %s16_s10 }
   0x3   :  { %p779_p1 = scmp.lt.u32.totalorder %s775_s13, %s905_s1 }
   0x5   :  { %p781_p2 = pnand %p779_p1, %p776_p0 }
   0x7   :  { %784 = shalt.err (!%p781_p2)
}
   0x8   :  { %s785_s18 = scalar_lea.vmem %s17_s10, 512  ;;  %p790_p4 = scmp.lt.s32.totalorder %s17_s10, %s17_s10 }
   0x9   :  { %p786_p3 = scmp.ne.s32.totalorder %s17_s10, %s785_s18  ;;  %p791_p5 = scmp.lt.s32.totalorder %s785_s18, %s785_s18 }
   0xb   :  { %p792_p6 = por %p791_p5, %p790_p4 }
   0xd   :  { %p793_p7 = pnand %p792_p6, %p786_p3 }
   0xf   :  { %796 = shalt.err (!%p793_p7)
}
  0x10   :  { %s824_s19 = smov 128   ;;  %s825_s20 = smov 8  }
  0x11   :  { %22 = dma.hbm_to_vmem [thread:$0]  %s905_s1, 512, %s17_s10, [#allocation3], %s824_s19, %s824_s19, %s825_s20  }
  0x12   :  { %819 = dma.done.wait [#allocation3], 512  }
  0x13   :  { %820 = vsyncadd [#allocation3], 4294966784  ;;  %v826_v0 = vmov 0   ;;  %v26_v1 = vld [vmem:[%s904_s0] sm:$0xff]  ;;  %v43_v3 = vld [vmem:[#allocation2 + $0x8] sm:$0xff]  ;;  %v28_v35 = vlaneseq  ;;  %vm46_vm0 = vcmask 261120  }
  0x14   :  { %774 = vset.pattern.permute.xlu0 %v826_v0  ;;  %v42_v2 = vld [vmem:[#allocation2] sm:$0xff]  ;;  %v27_v5 = vld [vmem:[%s904_s0 + $0x8] sm:$0xff]  ;;  %v57_v6 = vand.u32 4294901760, %v43_v3  ;;  %v44_v7 = vld [vmem:[#allocation2 + $0x10] sm:$0xff]  ;;  %v827_v38 = vmov 0.0   ;;  %s828_s0 = smov [#allocation5]  }
  0x15   :  { %31 = vperm.xlu0 %774, %v26_v1   ;;  %v54_v4 = vand.u32 4294901760, %v42_v2  ;;  %v45_v8 = vld [vmem:[#allocation2 + $0x18] sm:$0xff]  ;;  %v60_v10 = vand.u32 4294901760, %v44_v7  ;;  %v29_v36 = vand.u32 127, %v28_v35  ;;  %s588_s1 = sshll.u32 %s828_s0, 4  ;;  %s589_s1 = int_to_ptr.vmem [resolvable:$true] %s588_s1 }
  0x16   :  { %v63_v11 = vand.u32 4294901760, %v45_v8  ;;  %v151_v14 = vsub.f32 %v43_v3, %v57_v6  ;;  %s797_s27 = scalar_lea.vmem %s589_s1, 256  ;;  %p802_p9 = scmp.lt.s32.totalorder %s589_s1, %s589_s1 }
  0x17   :  { %v865_v9 = vpack.c.bf16 %v57_v6, %v54_v4  ;;  %v144_v13 = vsub.f32 %v42_v2, %v54_v4  ;;  %v158_v20 = vsub.f32 %v44_v7, %v60_v10  ;;  %p798_p8 = scmp.ne.s32.totalorder %s589_s1, %s797_s27  ;;  %p803_p10 = scmp.lt.s32.totalorder %s797_s27, %s797_s27 }
  0x18   :  { %v869_v12 = vpack.c.bf16 %v63_v11, %v60_v10  ;;  %v152_v16 = vand.u32 4294901760, %v151_v14  ;;  %v165_v21 = vsub.f32 %v45_v8, %v63_v11 }
  0x19   :  { %34 = vperm.xlu0 %774, %v27_v5   ;;  %735 = vmatprep.subr.bf16.mxu0 %v865_v9  ;;  %v145_v15 = vand.u32 4294901760, %v144_v13  ;;  %v159_v24 = vand.u32 4294901760, %v158_v20  ;;  %v726_v33 = vpack.c.bf16 %v151_v14, %v144_v13  ;;  %p804_p11 = por %p803_p10, %p802_p9 }
  0x1a   :  { %711 = vmatprep.subr.bf16.mxu1 %v865_v9  ;;  %737 = vmatpush3.bf16.msra.mxu0 %v865_v9  ;;  %v153_v19 = vsub.f32 %v151_v14, %v152_v16  ;;  %v166_v25 = vand.u32 4294901760, %v165_v21  ;;  %v730_v34 = vpack.c.bf16 %v165_v21, %v158_v20 }
  0x1b   :  { %713 = vmatpush3.bf16.msra.mxu1 %v865_v9  ;;  %739 = vmatprep.subr.bf16.mxu0 %v869_v12  ;;  %v742_v17 = vpack.c.bf16 %v152_v16, %v145_v15  ;;  %v146_v18 = vsub.f32 %v144_v13, %v145_v15  ;;  %v160_v28 = vsub.f32 %v158_v20, %v159_v24  ;;  %p805_p12 = pnand %p804_p11, %p798_p8 }
  0x1c   :  { %715 = vmatprep.subr.bf16.mxu1 %v869_v12  ;;  %v154_v23 = vand.u32 4294901760, %v153_v19  ;;  %v746_v27 = vpack.c.bf16 %v166_v25, %v159_v24  ;;  %v167_v29 = vsub.f32 %v165_v21, %v166_v25 }
  0x1d   :  { %v147_v22 = vand.u32 4294901760, %v146_v18  ;;  %v161_v30 = vand.u32 4294901760, %v160_v28 }
  0x1e   :  { %741 = vmatpush3.bf16.msra.mxu0 %v869_v12  ;;  %v168_v31 = vand.u32 4294901760, %v167_v29 }
  0x1f   :  { %717 = vmatpush3.bf16.msra.mxu1 %v869_v12  ;;  %743 = vmatprep.subr.bf16.mxu0 %v742_v17  ;;  %v718_v26 = vpack.c.bf16 %v154_v23, %v147_v22 }
  0x20   :  { %v722_v32 = vpack.c.bf16 %v168_v31, %v161_v30 }
  0x21   :  { %719 = vmatprep.subr.bf16.mxu1 %v718_v26 }
  0x94   :  { %v32_v37 = vpop.permute.xlu0 %31 }
  0x95   :  { %vm36_vm1 = vcmp.eq.s32.totalorder %v32_v37, %v29_v36 }
  0x96   :  { %v600_v39 = vsel %vm36_vm1, 1.0, %v827_v38 }
  0x97   :  { %v48_v40 = vsel %vm46_vm0, %v600_v39, 0 }
  0x98   :  { %v123_v41 = vsub.f32 %v48_v40, %v48_v40  ;;  %v35_v42 = vpop.permute.xlu0 %34 }
  0x99   :  { %vm37_vm2 = vcmp.eq.s32.totalorder %v35_v42, %v29_v36 }
  0x9a   :  { %v601_v43 = vsel %vm37_vm2, 1.0, %v827_v38  ;;  %v124_v44 = vand.u32 4294901760, %v123_v41 }
  0x9b   :  { %v51_v45 = vsel %vm46_vm0, %v601_v43, 0 }
  0x9c   :  { %v133_v46 = vsub.f32 %v51_v45, %v51_v45  ;;  %685 = vmatprep.mubr.f32.mxu0 %v124_v44  ;;  %v125_v47 = vsub.f32 %v123_v41, %v124_v44 }
  0x9e   :  { %v126_v48 = vand.u32 4294901760, %v125_v47  ;;  %v134_v49 = vand.u32 4294901760, %v133_v46 }
  0xa0   :  { %652 = vmatprep.mubr.f32.mxu1 %v126_v48  ;;  %686 = vmatmul.mubr.f32.vlgmr.msra.gmra.mrb[0].mxu0 %v134_v49  ;;  %v135_v50 = vsub.f32 %v133_v46, %v134_v49 }
  0xa1   :  { %745 = vmatpush3.bf16.msra.mxu0 %v742_v17  ;;  %696 = vmatprep.mubr.msk.f32.mxu0 %vm46_vm0, %v600_v39 }
  0xa2   :  { %v136_v51 = vand.u32 4294901760, %v135_v50  ;;  %747 = vmatprep.subr.bf16.mxu0 %v746_v27 }
  0xa4   :  { %653 = vmatmul.mubr.f32.vlgmr.msra.gmra.mrb[0].mxu1 %v136_v51 }
  0xa5   :  { %721 = vmatpush3.bf16.msra.mxu1 %v718_v26  ;;  %663 = vmatprep.mubr.msk.f32.mxu1 %vm46_vm0, %v600_v39 }
  0xa6   :  { %749 = vmatpush3.bf16.msra.mxu0 %v746_v27  ;;  %723 = vmatprep.subr.bf16.mxu1 %v722_v32 }
  0xa7   :  { %751 = vmatprep.subr.bf16.mxu0 %v865_v9 }
  0xa9   :  { %725 = vmatpush3.bf16.msra.mxu1 %v722_v32  ;;  %697 = vmatmul.mubr.msk.f32.vlgmr.msra.gmra.mrb[0].mxu0 %vm46_vm0, %v601_v43 }
  0xaa   :  { %753 = vmatpush3.bf16.msra.mxu0 %v865_v9  ;;  %707 = vmatprep.mubr.msk.f32.mxu0 %vm46_vm0, %v600_v39 }
  0xab   :  { %727 = vmatprep.subr.bf16.mxu1 %v726_v33  ;;  %755 = vmatprep.subr.bf16.mxu0 %v869_v12 }
  0xac   :  { %664 = vmatmul.mubr.msk.f32.vlgmr.msra.gmra.mrb[0].mxu1 %vm46_vm0, %v601_v43 }
  0xad   :  { %729 = vmatpush3.bf16.msra.mxu1 %v726_v33  ;;  %674 = vmatprep.mubr.f32.mxu1 %v123_v41 }
  0xae   :  { %757 = vmatpush3.bf16.msra.mxu0 %v869_v12  ;;  %731 = vmatprep.subr.bf16.mxu1 %v730_v34 }
  0xb1   :  { %733 = vmatpush3.bf16.msra.mxu1 %v730_v34  ;;  %708 = vmatmul.mubr.msk.f32.vlgmr.msra.gmra.mrb[0].mxu0 %vm46_vm0, %v601_v43 }
  0xb4   :  { %675 = vmatmul.mubr.f32.vlgmr.msra.gmra.mrb[0].mxu1 %v133_v46 }
 0x184   :  { %v709_v52 = vpop.f32.mrb[0].mxu0 }
 0x185   :  { %v571_v53 = vpop.f32.mrb[1].mxu0 }
 0x187   :  { %v676_v54 = vpop.f32.mrb[0].mxu1 }
 0x188   :  { %v758_v55 = vadd.f32 %v709_v52, %v676_v54  ;;  %v315_v56 = vpop.f32.mrb[1].mxu1 }
 0x189   :  { %v759_v57 = vadd.f32 %v571_v53, %v315_v56 }
 0x18a   :  { %582 = vst [vmem:[#allocation5 + $0x8] sm:$0xff] %v758_v55 }
 0x18b   :  { %581 = vst [vmem:[#allocation5] sm:$0xff] %v759_v57 }
 0x18c   :  { %808 = shalt.err (!%p805_p12)
}
 0x18d   :  { %s809_s30 = scalar_lea.hbm %s906_s2, 256 }
 0x18e   :  { %p810_p13 = scmp.ne.s32.totalorder %s906_s2, %s809_s30  ;;  %p813_p0 = scmp.lt.u32.totalorder %s809_s30, %s906_s2 }
 0x190   :  { %p815_p1 = pnand %p813_p0, %p810_p13 }
 0x192   :  { %818 = shalt.err (!%p815_p1)
}
 0x193   :  { %594 = dma.vmem_to_hbm [thread:$0]  %s589_s1, 256, %s906_s2, [#allocation4], %s824_s19, %s824_s19, %s825_s20  }
 0x194   :  { %821 = dma.done.wait [#allocation4], 256  }
 0x195   :  { %822 = vsyncadd [#allocation4], 4294967040 }
 0x196   :  { %598 = vsyncpa [#allocation3], 1 }
 0x197   :  { %599 = vsyncpa [#allocation4], 1 }

</bundles_post_ra>
